<compile_context>
chip_gen: v5e
topology: v5e:2x2
jax: 0.10.0
libtpu: 0.0.40
codegen_flags: <defaults>
</compile_context>

<pallas_src>
import jax
import jax.numpy as jnp
from jax import lax
from jax.experimental import pallas as pl
from jax.experimental.pallas import tpu as pltpu


def _mlp_kernel(x_ref, w1_ref, b1_ref, w2_ref, b2_ref, o_ref):
    """fc1 -> ReLU -> fc2 -> sigmoid on one batch tile; batch lands on lanes.

    x  : (TM, D)  native batch-major input tile (pipelined DMA from HBM)
    w1 : (H1, D)  fc1 weight (torch layout), VMEM-resident across the grid
    b1 : (H1, 1)  fc1 bias (f32, broadcast over lanes)
    w2 : (H1, 1)  fc2 weight (f32, broadcast over lanes)
    b2 : (1, 1)   fc2 bias, scalar in SMEM
    o  : (1, TM)  lane-dense output row (unmasked full-lane stores)
    """
    # fc1 on the MXU, contracting D of both operands:
    #   (H1, D) . (TM, D) -> (H1, TM); batch goes to lanes with no wrapper transpose.
    h = lax.dot_general(
        w1_ref[...], x_ref[...],
        dimension_numbers=(((1,), (1,)), ((), ())),
        preferred_element_type=jnp.float32,
    )
    h = jnp.maximum(h + b1_ref[...], 0.0)                     # bias + ReLU (VPU)
    # fc2 (H1 -> 1) off the MXU: per-lane multiply (VPU) + sublane reduce (XLU)
    # produces the lane-dense (1, TM) row directly.
    z = jnp.sum(h * w2_ref[...], axis=0, keepdims=True) + b2_ref[0, 0]
    # Exact sigmoid: only touches B elements total, EUP cost is unmeasurable.
    o_ref[...] = (1.0 / (1.0 + jnp.exp(-z))).astype(o_ref.dtype)


def _round_up(n, m):
    return -(-n // m) * m


def _round_down(n, m):
    return (n // m) * m


def _vmem_budget_bytes():
    """Per-generation budget for the double-buffered x tile (leaves headroom for
    the (H1, TM) intermediate and output buffers under the scoped-VMEM default)."""
    try:
        cap = pltpu.get_tpu_info().vmem_capacity_bytes
    except Exception:
        cap = 64 << 20  # conservative (v7x-sized) fallback
    return min(cap // 8, 16 << 20)   # v7x (64 MiB) -> 8 MiB; v5e/v6e (128 MiB) -> 16 MiB


def sentiment_classifier_forward(x, w1, b1, w2, b2, *, tile_m=None):
    """Pallas forward pass of SentimentClassifier.

    x : (B, D)          (any float dtype; used as-is — no wrapper-side cast/pad)
    w1: (D, H1) float   (torch fc1.weight.T)
    b1: (H1,)   float
    w2: (H1, 1) float   (torch fc2.weight.T)
    b2: (1,)    float
    returns (B, 1) float32
    """
    B, D = x.shape
    H1 = w1.shape[1]
    ebytes = jnp.dtype(x.dtype).itemsize

    if tile_m is None:
        # Size the tile against the VMEM budget (2 pipeline buffers of x),
        # cap at 32768 lanes, and keep >= 2 balanced grid steps so the
        # "parallel" axis can shard across both TensorCores on v7x.
        tm = _round_down(_vmem_budget_bytes() // (2 * D * ebytes), 128)
        tm = min(max(tm, 128), 32768)
        tm = min(tm, _round_up(pl.cdiv(B, 2), 128))
    else:
        tm = max(128, _round_up(tile_m, 128))
    grid = (pl.cdiv(B, tm),)

    # Tiny parameter tensors: reshape/cast wrapper-side (negligible HBM traffic).
    w1T = w1.T.astype(x.dtype)                       # (H1, D), matches x for the MXU
    b1_2d = b1.reshape(H1, 1).astype(jnp.float32)
    w2_2d = w2.reshape(H1, 1).astype(jnp.float32)
    b2_2d = b2.reshape(1, 1).astype(jnp.float32)

    cost = pl.CostEstimate(
        flops=2 * B * H1 * (D + 1),
        transcendentals=B,
        bytes_accessed=B * D * ebytes + B * 4 + H1 * D * ebytes + (2 * H1 + 1) * 4,
    )

    out = pl.pallas_call(
        _mlp_kernel,
        out_shape=jax.ShapeDtypeStruct((1, B), jnp.float32),
        grid=grid,
        in_specs=[
            pl.BlockSpec((tm, D), lambda i: (i, 0)),      # x tile: pipelined DMA, native layout
            pl.BlockSpec((H1, D), lambda i: (0, 0)),      # weights stay VMEM-resident
            pl.BlockSpec((H1, 1), lambda i: (0, 0)),
            pl.BlockSpec((H1, 1), lambda i: (0, 0)),
            pl.BlockSpec(memory_space=pltpu.MemorySpace.SMEM),  # scalar fc2 bias
        ],
        out_specs=pl.BlockSpec((1, tm), lambda i: (0, i)),  # lane-dense output slab
        compiler_params=pltpu.CompilerParams(
            dimension_semantics=("parallel",),  # shard batch tiles across TCs (v7x)
        ),
        cost_estimate=cost,
    )(x, w1T, b1_2d, w2_2d, b2_2d)

    return out.reshape(B, 1)


def init_params(key, input_size, hidden=10):
    """Deterministic init mimicking torch.nn.Linear (uniform +/- 1/sqrt(fan_in))."""
    k1, k2, k3, k4 = jax.random.split(key, 4)
    lim1 = 1.0 / jnp.sqrt(jnp.float32(input_size))
    lim2 = 1.0 / jnp.sqrt(jnp.float32(hidden))
    w1 = jax.random.uniform(k1, (input_size, hidden), jnp.float32, -lim1, lim1)
    b1 = jax.random.uniform(k2, (hidden,), jnp.float32, -lim1, lim1)
    w2 = jax.random.uniform(k3, (hidden, 1), jnp.float32, -lim2, lim2)
    b2 = jax.random.uniform(k4, (1,), jnp.float32, -lim2, lim2)
    return w1, b1, w2, b2


if __name__ == "__main__":
    key = jax.random.PRNGKey(0)
    kx, kp, kx2 = jax.random.split(key, 3)

    input_size = 32
    hidden = 10
    w1, b1, w2, b2 = init_params(kp, input_size, hidden)

    def ref_forward(xx):
        # Same math as the torch module, in plain JAX (HIGHEST matmul precision).
        h = jnp.maximum(jnp.dot(xx, w1, precision=jax.lax.Precision.HIGHEST) + b1, 0.0)
        z = jnp.dot(h, w2, precision=jax.lax.Precision.HIGHEST) + b2
        return 1.0 / (1.0 + jnp.exp(-z))

    # Small single-(partial-)tile case: batch=8, handled by boundary masking.
    x = jax.random.normal(kx, (8, input_size), dtype=jnp.float32)
    out = jax.block_until_ready(sentiment_classifier_forward(x, w1, b1, w2, b2))
    assert out.shape == (8, 1)
    # Much tighter than the previous 1e-2 (exact sigmoid now); remaining slack
    # only covers MXU f32 pass decomposition.
    assert jnp.allclose(out, ref_forward(x), atol=1e-3, rtol=1e-3)

    # Ragged multi-tile case: batch=300 with a forced 128-lane tile -> 3 grid
    # steps, ragged last block masked by Pallas (no wrapper pad / transpose).
    x_big = jax.random.normal(kx2, (300, input_size), dtype=jnp.float32)
    out_big = jax.block_until_ready(
        sentiment_classifier_forward(x_big, w1, b1, w2, b2, tile_m=128))
    assert out_big.shape == (300, 1)
    assert jnp.allclose(out_big, ref_forward(x_big), atol=1e-3, rtol=1e-3)

    # Same batch with adaptive tiling (keeps >= 2 grid steps for v7x megacore).
    out_auto = jax.block_until_ready(
        sentiment_classifier_forward(x_big, w1, b1, w2, b2))
    assert out_auto.shape == (300, 1)
    assert jnp.allclose(out_auto, ref_forward(x_big), atol=1e-3, rtol=1e-3)

    print("KERNEL_OK")
</pallas_src>

<mosaic_0001>
module attributes {stable_mosaic.version = 11 : i64} {
  func.func @_mlp_kernel(%arg0: i32, %arg1: memref<128x32xf32, #tpu.memory_space<vmem>>, %arg2: memref<10x32xf32, #tpu.memory_space<vmem>>, %arg3: memref<10x1xf32, #tpu.memory_space<vmem>>, %arg4: memref<10x1xf32, #tpu.memory_space<vmem>>, %arg5: memref<1x1xf32, #tpu.memory_space<smem>>, %arg6: memref<1x128xf32, #tpu.memory_space<vmem>>) attributes {dimension_semantics = [#tpu.dimension_semantics<parallel>], iteration_bounds = array<i64: 1>, scalar_prefetch = 0 : i64, scratch_operands = 0 : i64, tpu.core_type = #tpu.core_type<tc>, window_params = [{transform_indices = @transform_0, window_bounds = array<i64: 128, 32>}, {pipeline_mode = #tpu.pipeline_mode<synchronous>, transform_indices = @transform_1, window_bounds = array<i64: 10, 32>}, {pipeline_mode = #tpu.pipeline_mode<synchronous>, transform_indices = @transform_2, window_bounds = array<i64: 10, 1>}, {pipeline_mode = #tpu.pipeline_mode<synchronous>, transform_indices = @transform_3, window_bounds = array<i64: 10, 1>}, {transform_indices = @transform_4, window_bounds = array<i64: 1, 1>}, {transform_indices = @transform_5, window_bounds = array<i64: 1, 128>}]} {
    %c0 = arith.constant 0 : index
    %c0_0 = arith.constant 0 : index
    %0 = vector.load %arg2[%c0, %c0_0] : memref<10x32xf32, #tpu.memory_space<vmem>>, vector<10x32xf32>
    %c0_1 = arith.constant 0 : index
    %c0_2 = arith.constant 0 : index
    %1 = vector.load %arg1[%c0_1, %c0_2] : memref<128x32xf32, #tpu.memory_space<vmem>>, vector<128x32xf32>
    %cst = arith.constant dense<0.000000e+00> : vector<10x128xf32>
    %2 = tpu.matmul %0, %1, %cst {dimension_numbers = #tpu.dot_dimension_numbers<[1], [1], [0], [0], [0, 0, 1, 0], [], []>} : vector<10x32xf32>, vector<128x32xf32>, vector<10x128xf32> -> vector<10x128xf32>
    %c0_3 = arith.constant 0 : index
    %c0_4 = arith.constant 0 : index
    %3 = vector.load %arg3[%c0_3, %c0_4] : memref<10x1xf32, #tpu.memory_space<vmem>>, vector<10x1xf32>
    %4 = vector.broadcast %3 : vector<10x1xf32> to vector<10x128xf32>
    %5 = arith.addf %2, %4 : vector<10x128xf32>
    %cst_5 = arith.constant 0.000000e+00 : f32
    %6 = vector.broadcast %cst_5 : f32 to vector<10x128xf32>
    %7 = arith.maximumf %5, %6 : vector<10x128xf32>
    %c0_6 = arith.constant 0 : index
    %c0_7 = arith.constant 0 : index
    %8 = vector.load %arg4[%c0_6, %c0_7] : memref<10x1xf32, #tpu.memory_space<vmem>>, vector<10x1xf32>
    %9 = vector.broadcast %8 : vector<10x1xf32> to vector<10x128xf32>
    %10 = arith.mulf %7, %9 : vector<10x128xf32>
    %cst_8 = arith.constant dense<0.000000e+00> : vector<128xf32>
    %11 = vector.multi_reduction <add>, %10, %cst_8 [0] : vector<10x128xf32> to vector<128xf32>
    %12 = vector.shape_cast %11 : vector<128xf32> to vector<1x128xf32>
    %c0_9 = arith.constant 0 : index
    %c0_10 = arith.constant 0 : index
    %13 = memref.load %arg5[%c0_9, %c0_10] : memref<1x1xf32, #tpu.memory_space<smem>>
    %14 = vector.broadcast %13 : f32 to vector<1x128xf32>
    %15 = arith.addf %12, %14 : vector<1x128xf32>
    %cst_11 = arith.constant 0.000000e+00 : f32
    %16 = vector.broadcast %cst_11 : f32 to vector<1x128xf32>
    %17 = arith.subf %16, %15 : vector<1x128xf32>
    %18 = math.exp %17 : vector<1x128xf32>
    %cst_12 = arith.constant 1.000000e+00 : f32
    %19 = vector.broadcast %cst_12 : f32 to vector<1x128xf32>
    %20 = arith.addf %19, %18 : vector<1x128xf32>
    %cst_13 = arith.constant 1.000000e+00 : f32
    %21 = vector.broadcast %cst_13 : f32 to vector<1x128xf32>
    %22 = arith.divf %21, %20 : vector<1x128xf32>
    %c0_14 = arith.constant 0 : index
    %c0_15 = arith.constant 0 : index
    %23 = vector.load %arg6[%c0_14, %c0_15] : memref<1x128xf32, #tpu.memory_space<vmem>>, vector<1x128xf32>
    tpu.vector_store %arg6[%c0_14, %c0_15], %22 {strides = array<i32>} : memref<1x128xf32, #tpu.memory_space<vmem>>, vector<1x128xf32>,
    return
  }
  func.func @transform_0(%arg0: i32) -> (i32, i32) {
    %c0_i32 = arith.constant 0 : i32
    %c0_i32_0 = arith.constant 0 : i32
    return %arg0, %c0_i32 : i32, i32
  }
  func.func @transform_1(%arg0: i32) -> (i32, i32) {
    %c0_i32 = arith.constant 0 : i32
    %c0_i32_0 = arith.constant 0 : i32
    %c0_i32_1 = arith.constant 0 : i32
    return %c0_i32, %c0_i32_0 : i32, i32
  }
  func.func @transform_2(%arg0: i32) -> (i32, i32) {
    %c0_i32 = arith.constant 0 : i32
    %c0_i32_0 = arith.constant 0 : i32
    %c0_i32_1 = arith.constant 0 : i32
    return %c0_i32, %c0_i32_0 : i32, i32
  }
  func.func @transform_3(%arg0: i32) -> (i32, i32) {
    %c0_i32 = arith.constant 0 : i32
    %c0_i32_0 = arith.constant 0 : i32
    %c0_i32_1 = arith.constant 0 : i32
    return %c0_i32, %c0_i32_0 : i32, i32
  }
  func.func @transform_4(%arg0: i32) -> (i32, i32) {
    %c0_i32 = arith.constant 0 : i32
    %c0_i32_0 = arith.constant 0 : i32
    %c0_i32_1 = arith.constant 0 : i32
    return %c0_i32, %c0_i32_0 : i32, i32
  }
  func.func @transform_5(%arg0: i32) -> (i32, i32) {
    %c0_i32 = arith.constant 0 : i32
    %c0_i32_0 = arith.constant 0 : i32
    return %c0_i32, %arg0 : i32, i32
  }
}

</mosaic_0001>

<bundles_post_ra>
// kernel: tpu_custom_call.1
= control target key start
LH: loop header
LB: loop body
LE: loop exit
PB: predicated region body
PF: predicated region fallthrough
CT: control target
= control target key end

     0   :  { %vm52_vm0 = vcmask 261120   ;;  %s400_s0 = inlined_call_operand.vmem [shape: f32[8,32], index: 0, kind: input, shape index: {}]   ;;  %s401_s1 = inlined_call_operand.vmem [shape: f32[10,32], index: 1, kind: input, shape index: {}]   ;;  %s402_s2 = inlined_call_operand.vmem [shape: f32[10,1], index: 2, kind: input, shape index: {}]   ;;  %s403_s3 = inlined_call_operand.vmem [shape: f32[10,1], index: 3, kind: input, shape index: {}]   ;;  %s404_s4 = inlined_call_operand.<no memory space> [shape: f32[1,1], index: 4, kind: input, shape index: {}]   ;;  %s405_s5 = inlined_call_operand.hbm [shape: f32[1,8], index: 5, kind: output, shape index: {}]  }
   0x1   :  { %v39_v0 = vld [vmem:[%s400_s0 + $0x78] sm:$0xff]  ;;  %v38_v1 = vld [vmem:[%s400_s0 + $0x70] sm:$0xff] }
   0x2   :  { %194 = vmatpush.xpose.msk.msra.mxu0 %vm52_vm0, %v39_v0  ;;  %212 = vmatpush.xpose.msk.msra.mxu1 %vm52_vm0, %v39_v0 }
   0x3   :  { %11 = vsyncpa [#allocation4], 0  ;;  %v37_v2 = vld [vmem:[%s400_s0 + $0x68] sm:$0xff]  ;;  %v36_v3 = vld [vmem:[%s400_s0 + $0x60] sm:$0xff]  ;;  %v262_v9 = vmov 0   ;;  %vm146_vm1 = vcmask 1041408   ;;  %v156_v42 = vstv %s404_s4 }
   0x4   :  { %v35_v4 = vld [vmem:[%s400_s0 + $0x58] sm:$0xff]  ;;  %v34_v5 = vld [vmem:[%s400_s0 + $0x50] sm:$0xff]  ;;  %v33_v6 = vld [vmem:[%s400_s0 + $0x48] sm:$0xff]  ;;  %230 = vset.pattern.permute.xlu0 %v262_v9  ;;  %231 = vset.pattern.permute.xlu1 %v262_v9  ;;  %s263_s10 = smov [#allocation3]   ;;  %s185_s4 = sshll.u32 %s405_s5, 4  ;;  %s186_s4 = int_to_ptr.hbm [resolvable:$true] %s185_s4 }
   0x5   :  { %v41_v7 = vld [vmem:[%s402_s2 + $0x8] sm:$0x3]  ;;  %v32_v8 = vld [vmem:[%s400_s0 + $0x40] sm:$0xff]  ;;  %v31_v11 = vld [vmem:[%s400_s0 + $0x38] sm:$0xff]  ;;  %s183_s11 = sshll.u32 %s263_s10, 4  ;;  %s184_s11 = int_to_ptr.vmem [resolvable:$true] %s183_s11 }
   0x6   :  { %195 = vmatpush.xpose.msk.msra.mxu0 %vm52_vm0, %v38_v1  ;;  %213 = vmatpush.xpose.msk.msra.mxu1 %vm52_vm0, %v38_v1  ;;  %v133_v10 = vld [vmem:[%s403_s3 + $0x8] sm:$0x3]  ;;  %v40_v12 = vld [vmem:[%s402_s2] sm:$0xff]  ;;  %v30_v13 = vld [vmem:[%s400_s0 + $0x30] sm:$0xff] }
   0x7   :  { %49 = vperm.xlu0 %230, %v41_v7   ;;  %141 = vperm.xlu1 %231, %v133_v10   ;;  %v132_v14 = vld [vmem:[%s403_s3] sm:$0xff]  ;;  %v29_v15 = vld [vmem:[%s400_s0 + $0x28] sm:$0xff]  ;;  %v27_v17 = vld [vmem:[%s400_s0 + $0x18] sm:$0xff] }
   0x8   :  { %v28_v16 = vld [vmem:[%s400_s0 + $0x20] sm:$0xff]  ;;  %v26_v18 = vld [vmem:[%s400_s0 + $0x10] sm:$0xff]  ;;  %v25_v19 = vld [vmem:[%s400_s0 + $0x8] sm:$0xff] }
   0x9   :  { %v24_v20 = vld [vmem:[%s400_s0] sm:$0xff]  ;;  %v23_v22 = vld [vmem:[%s401_s1 + $0x8] sm:$0x3] }
   0xa   :  { %196 = vmatpush.xpose.msk.msra.mxu0 %vm52_vm0, %v37_v2  ;;  %214 = vmatpush.xpose.msk.msra.mxu1 %vm52_vm0, %v37_v2  ;;  %v22_v21 = vld [vmem:[%s401_s1] sm:$0xff] }
   0xe   :  { %197 = vmatpush.xpose.msk.msra.mxu0 %vm52_vm0, %v36_v3  ;;  %215 = vmatpush.xpose.msk.msra.mxu1 %vm52_vm0, %v36_v3 }
   0xf   :  { %44 = vperm.xlu0 %230, %v40_v12   ;;  %136 = vperm.xlu1 %231, %v132_v14  }
  0x12   :  { %198 = vmatpush.xpose.msk.msra.mxu0 %vm52_vm0, %v35_v4  ;;  %216 = vmatpush.xpose.msk.msra.mxu1 %vm52_vm0, %v35_v4 }
  0x16   :  { %199 = vmatpush.xpose.msk.msra.mxu0 %vm52_vm0, %v34_v5  ;;  %217 = vmatpush.xpose.msk.msra.mxu1 %vm52_vm0, %v34_v5 }
  0x1a   :  { %200 = vmatpush.xpose.msk.msra.mxu0 %vm52_vm0, %v33_v6  ;;  %218 = vmatpush.xpose.msk.msra.mxu1 %vm52_vm0, %v33_v6 }
  0x1e   :  { %201 = vmatpush.xpose.msk.msra.mxu0 %vm52_vm0, %v32_v8  ;;  %219 = vmatpush.xpose.msk.msra.mxu1 %vm52_vm0, %v32_v8 }
  0x22   :  { %202 = vmatpush.xpose.msk.msra.mxu0 %vm52_vm0, %v31_v11  ;;  %220 = vmatpush.xpose.msk.msra.mxu1 %vm52_vm0, %v31_v11 }
  0x26   :  { %203 = vmatpush.xpose.msk.msra.mxu0 %vm52_vm0, %v30_v13  ;;  %221 = vmatpush.xpose.msk.msra.mxu1 %vm52_vm0, %v30_v13 }
  0x2a   :  { %204 = vmatpush.xpose.msk.msra.mxu0 %vm52_vm0, %v29_v15  ;;  %222 = vmatpush.xpose.msk.msra.mxu1 %vm52_vm0, %v29_v15 }
  0x2e   :  { %205 = vmatpush.xpose.msk.msra.mxu0 %vm52_vm0, %v28_v16  ;;  %223 = vmatpush.xpose.msk.msra.mxu1 %vm52_vm0, %v28_v16 }
  0x32   :  { %206 = vmatpush.xpose.msk.msra.mxu0 %vm52_vm0, %v27_v17  ;;  %224 = vmatpush.xpose.msk.msra.mxu1 %vm52_vm0, %v27_v17 }
  0x36   :  { %207 = vmatpush.xpose.msk.msra.mxu0 %vm52_vm0, %v26_v18  ;;  %225 = vmatpush.xpose.msk.msra.mxu1 %vm52_vm0, %v26_v18 }
  0x3a   :  { %208 = vmatpush.xpose.msk.msra.mxu0 %vm52_vm0, %v25_v19  ;;  %226 = vmatpush.xpose.msk.msra.mxu1 %vm52_vm0, %v25_v19 }
  0x3e   :  { %209 = vmatpush.xpose.msk.msra.mxu0 %vm52_vm0, %v24_v20  ;;  %227 = vmatpush.xpose.msk.msra.mxu1 %vm52_vm0, %v24_v20 }
  0x41   :  { %210 = vmatmul.msk.f32.vlgmr.msra.gmra.mxu0 %vm52_vm0, %v22_v21  ;;  %211 = vmatmul.msk.f32.vlgmr.msra.gmra.mxu1 %vm52_vm0, %v23_v22 }
  0x79   :  { %v50_v23 = vpop.permute.xlu0 %49  ;;  %v142_v24 = vpop.permute.xlu1 %141 }
  0x81   :  { %v45_v25 = vpop.permute.xlu0 %44  ;;  %v137_v32 = vpop.permute.xlu1 %136 }
  0xbe   :  { %v124_v26 = vpop.f32.mrf.mxu0  ;;  %v127_v27 = vpop.f32.mrf.mxu1 }
  0xbf   :  { %v125_v28 = vadd.f32 %v124_v26, %v45_v25  ;;  %v128_v29 = vadd.f32 %v127_v27, %v50_v23 }
  0xc1   :  { %v130_v30 = vmax.f32 %v125_v28, 0.0  ;;  %v131_v31 = vmax.f32 %v128_v29, 0.0 }
  0xc3   :  { %v144_v33 = vmul.f32 %v137_v32, %v130_v30  ;;  %v145_v34 = vmul.f32 %v142_v24, %v131_v31 }
  0xc5   :  { %v147_v35 = vsel %vm146_vm1, %v145_v34, 0.0 }
  0xc6   :  { %v148_v36 = vadd.f32 %v147_v35, %v144_v33 }
  0xc8   :  { %v149_v37 = vrot.slane %v148_v36, 4 }
  0xca   :  { %v150_v38 = vadd.f32 %v149_v37, %v148_v36 }
  0xcc   :  { %v151_v39 = vrot.slane %v150_v38, 2 }
  0xce   :  { %v152_v40 = vadd.f32 %v151_v39, %v150_v38 }
  0xd0   :  { %v153_v41 = vrot.slane %v152_v40, 1 }
  0xd2   :  { %v154_v43 = vadd.f32 %v153_v41, %v152_v40 }
  0xd4   :  { %v157_v44 = vadd.f32 %v156_v42, %v154_v43 }
  0xd6   :  { %v158_v45 = vsub.f32 0.0, %v157_v44 }
  0xd8   :  { %v159_v46 = vmul.f32 1.442695, %v158_v45 }
  0xda   :  { %232 = vpow2.f32 %v159_v46 }
  0xe0   :  { %v233_v47 = vpop.eup %232 }
  0xe1   :  { %v161_v48 = vadd.f32 1.0, %v233_v47 }
  0xe3   :  { %234 = vrcp.f32 %v161_v48  ;;  %v173_v52 = vand.u32 2147483648, %v161_v48  ;;  %v171_v54 = vand.u32 2147483647, %v161_v48  ;;  %vm167_vm3 = vweird.f32 %v161_v48 }
  0xe5   :  { %v174_v56 = vor.u32 1.1754944e-38, %v173_v52  ;;  %vm172_vm5 = vcmp.eq.f32.partialorder %v171_v54, 8.507059e+37 }
  0xe9   :  { %v235_v49 = vpop.eup %234 }
  0xea   :  { %v163_v50 = vmul.f32 %v235_v49, %v161_v48  ;;  %vm168_vm2 = vweird.f32 %v235_v49 }
  0xeb   :  { %vm169_vm4 = vmor %vm167_vm3, %vm168_vm2 }
  0xec   :  { %v164_v51 = vsub.f32 1.0, %v163_v50 }
  0xee   :  { %v165_v53 = vmul.f32 %v235_v49, %v164_v51 }
  0xf0   :  { %v166_v55 = vadd.f32 %v235_v49, %v165_v53 }
  0xf2   :  { %v170_v57 = vsel %vm169_vm4, %v235_v49, %v166_v55 }
  0xf3   :  { %v175_v58 = vsel %vm172_vm5, %v174_v56, %v170_v57 }
  0xf4   :  { %177 = vst [vmem:[#allocation3] sm:$0x1] %v175_v58 }
  0xf5   :  { %188 = dma.vmem_to_hbm [thread:$0]  %s184_s11, 16, %s186_s4, [#allocation4]  }
  0xf6   :  { %260 = dma.done.wait [#allocation4], 16  }
  0xf7   :  { %261 = vsyncadd [#allocation4], 4294967280 }
  0xf8   :  { %193 = vsyncpa [#allocation4], 1 }

</bundles_post_ra>
